<compile_context>
chip_gen: v7x
topology: tpu7x:2x2x1
jax: 0.10.0
libtpu: 0.0.40
codegen_flags: <defaults>
</compile_context>

<pallas_src>
import functools

import jax
import jax.numpy as jnp
from jax.experimental import pallas as pl
from jax.experimental.pallas import tpu as pltpu

LANE = 128


def _round_up(n, m):
    return ((n + m - 1) // m) * m


def _tpu_vmem_capacity():
    try:
        return int(pltpu.get_tpu_info().vmem_capacity_bytes)
    except Exception:
        # Conservative fallback (valid on every generation, incl. v7x's 64 MiB/TC).
        return 64 * 1024 * 1024


def _vmem_budget(cap):
    if cap <= 64 * 1024 * 1024:
        # v7x: never request 100% of physical VMEM; leave headroom for compiler
        # internal scratch / semaphores.
        return 52 * 1024 * 1024
    # 128 MiB parts (v5e/v6e): use most of it (v5e's scoped default is only 16 MiB,
    # so the explicit limit is mandatory there).
    return min(cap - 24 * 1024 * 1024, 104 * 1024 * 1024)


def _plan_tiles(m, din_pad, hp, dp, c_item, o_item, *, block_m, block_h, budget):
    """Pick (tm, th): M tile and hidden-chunk sizes that fit the VMEM budget.
    th always divides hp exactly (partial hidden blocks would read garbage)."""
    min_align = 16 if c_item < 4 else 8

    # --- M tile ---
    if m > block_m:
        tm = block_m
    elif m >= 512:
        # Force >=2 M tiles so both v7x TensorCores get work and the x/out
        # streams actually pipeline.
        tm = min(block_m, _round_up(pl.cdiv(m, 2), min_align))
    else:
        tm = m  # single tile; block == full array dim is always legal

    def _fixed_bytes(tm_, chunked):
        b = tm_ * din_pad * c_item * 2      # x tile, double-buffered
        b += tm_ * dp * o_item * 2          # out tile, double-buffered
        b += dp * 4                         # b2, single-buffered
        if chunked:
            b += tm_ * dp * 4               # f32 accumulator scratch
        return b

    k_total = hp // LANE
    while True:
        # Full weight residency (single H step, single-buffered weights).
        if block_h is None:
            need = (_fixed_bytes(tm, False)
                    + din_pad * hp * c_item + hp * dp * c_item + hp * 4   # w1,w2,b1
                    + tm * hp * 4)                                        # intermediate
            if need <= budget:
                return tm, hp
        # H-chunked: w1/w2/b1 double-buffered along the H axis.
        per_k = LANE * (tm * 4 + 2 * (din_pad * c_item + dp * c_item + 4))
        fixed = _fixed_bytes(tm, True)
        k_cap = k_total
        if block_h is not None:
            k_cap = min(k_cap, max(block_h // LANE, 1))
        k_max = min(max((budget - fixed) // per_k, 1), k_cap)
        k = next(kk for kk in range(int(k_max), 0, -1) if k_total % kk == 0)
        if fixed + k * per_k <= budget or tm <= min_align:
            return tm, LANE * k
        # Doesn't fit: shrink the M tile and retry.
        tm = max(_round_up(tm // 2, min_align), min_align)


def _ffn_kernel(seed_ref, x_ref, w1_ref, b1_ref, w2_ref, b2_ref, *rest,
                compute_dtype, precision, apply_dropout, in_kernel_prng,
                threshold, inv_keep, multi_h):
    rest = list(rest)
    bits_ref = rest.pop(0) if (apply_dropout and not in_kernel_prng) else None
    o_ref = rest.pop(0)
    acc_ref = rest.pop(0) if multi_h else None

    # linear1 chunk: (tm, Din_pad) @ (Din_pad, th) on the MXU, f32 accumulate.
    h_chunk = jnp.dot(x_ref[...], w1_ref[...],
                      preferred_element_type=jnp.float32, precision=precision)
    h_chunk = h_chunk + b1_ref[...]

    # linear2 partial: (tm, th) @ (th, dp); cast to the MXU compute dtype.
    y_part = jnp.dot(h_chunk.astype(compute_dtype), w2_ref[...],
                     preferred_element_type=jnp.float32, precision=precision)

    def _finalize(y):
        y = y + b2_ref[...]
        if apply_dropout:
            # TODO(synk): statistically-equivalent inverted dropout; not
            # bit-identical to torch.nn.Dropout's RNG stream.
            if in_kernel_prng:
                # Per-M-tile seed so every tile gets an independent mask.
                pltpu.prng_seed(seed_ref[0] + pl.program_id(0))
                bits = pltpu.prng_random_bits(y.shape)
                if bits.dtype != jnp.uint32:
                    bits = pltpu.bitcast(bits, jnp.uint32)
            else:
                bits = bits_ref[...]
            # keep iff bits >= p * 2^32 -> P(keep) = 1 - p; one compare + one select.
            keep = bits >= jnp.uint32(threshold)
            y = jnp.where(keep, y * jnp.float32(inv_keep), jnp.float32(0.0))
        o_ref[...] = y.astype(o_ref.dtype)

    if multi_h:
        h_idx = pl.program_id(1)

        @pl.when(h_idx == 0)
        def _():
            acc_ref[...] = y_part

        @pl.when(h_idx != 0)
        def _():
            acc_ref[...] += y_part

        @pl.when(h_idx == pl.num_programs(1) - 1)
        def _():
            _finalize(acc_ref[...])
    else:
        _finalize(y_part)


def prepare_params(w1, b1, w2, b2, *, compute_dtype=None):
    """One-time glue (hoisted out of the hot path): transpose torch-layout weights
    to [in, out], zero-pad Din / hidden / out dims to multiples of 128 (lane-dense
    MXU tiles, full K passes, unmasked vst stores), cast to the compute dtype."""
    w1 = jnp.asarray(w1)
    b1 = jnp.asarray(b1)
    w2 = jnp.asarray(w2)
    b2 = jnp.asarray(b2)
    hidden, din = w1.shape
    dout = w2.shape[0]
    cdt = jnp.dtype(compute_dtype) if compute_dtype is not None else w1.dtype

    dinp = _round_up(din, LANE)   # 256 alignment is marginally better on v6e/v7x
    hp = _round_up(hidden, LANE)
    dp = _round_up(dout, LANE)

    w1_t = jnp.pad(w1.T.astype(cdt), ((0, dinp - din), (0, hp - hidden)))   # (Dinp, Hp)
    w2_t = jnp.pad(w2.T.astype(cdt), ((0, hp - hidden), (0, dp - dout)))    # (Hp, Dp)
    b1_p = jnp.pad(b1.astype(jnp.float32), (0, hp - hidden)).reshape(1, hp)
    b2_p = jnp.pad(b2.astype(jnp.float32), (0, dp - dout)).reshape(1, dp)

    return dict(w1=w1_t, b1=b1_p, w2=w2_t, b2=b2_p,
                din=din, din_pad=dinp, hidden_pad=hp, dout=dout, dout_pad=dp,
                compute_dtype=cdt)


def feed_forward(x, params, *, dropout_p=0.1, training=True, seed=0,
                 block_m=None, block_h=None, precision=None,
                 use_tpu_prng=None, crop_output=True, x_buffer_count=None):
    """x: [..., input_dim]; params from prepare_params().

    precision: lax.Precision for the matmuls (None = DEFAULT; pass HIGHEST only
    if bit-tight torch-f32 parity is required — it costs 3-6x MXU passes).
    crop_output=False returns the lane-padded [..., dout_pad] output so consumers
    can fuse the crop instead of paying an extra HBM pass.
    x_buffer_count: set to 3 on v7x if profiling shows exposed DMA on the x stream.
    """
    assert 0.0 <= dropout_p < 1.0
    orig_shape = x.shape
    out_dtype = x.dtype
    din, dinp = params["din"], params["din_pad"]
    assert orig_shape[-1] == din
    hp, dout, dp = params["hidden_pad"], params["dout"], params["dout_pad"]
    cdt = params["compute_dtype"]
    c_item = jnp.dtype(cdt).itemsize
    o_item = jnp.dtype(out_dtype).itemsize

    # Per-generation VMEM budget & default M block.
    cap = _tpu_vmem_capacity()
    budget = _vmem_budget(cap)
    if block_m is None:
        block_m = 512 if cap <= 64 * 1024 * 1024 else 1024

    # Cast + pad activations once outside the kernel (lane-dense, aligned K).
    x2d = x.reshape(-1, din).astype(cdt)
    if dinp != din:
        x2d = jnp.pad(x2d, ((0, 0), (0, dinp - din)))
    m = x2d.shape[0]

    tm, th = _plan_tiles(m, dinp, hp, dp, c_item, o_item,
                         block_m=block_m, block_h=block_h, budget=budget)
    n_m = pl.cdiv(m, tm)
    n_h = hp // th
    multi_h = n_h > 1
    grid = (n_m, n_h)

    apply_dropout = bool(training) and dropout_p > 0.0
    if use_tpu_prng is None:
        use_tpu_prng = jax.default_backend() == "tpu"
    in_kernel_prng = apply_dropout and use_tpu_prng

    threshold = min(int(round(dropout_p * (1 << 32))), (1 << 32) - 1)
    inv_keep = 1.0 / (1.0 - dropout_p) if dropout_p > 0.0 else 1.0
    seed_arr = jnp.asarray([seed], dtype=jnp.int32)

    def _spec(shape, index_map, buffers=None):
        if buffers is None:
            return pl.BlockSpec(shape, index_map)
        # Constant-index (resident) operands: single buffer, no double-buffer tax.
        return pl.BlockSpec(shape, index_map, pipeline_mode=pl.Buffered(buffers))

    w_buf = None if multi_h else 1   # resident weights when there is a single H chunk
    in_specs = [
        _spec((tm, dinp), lambda i, h, s: (i, 0), x_buffer_count),  # x: streamed over M
        _spec((dinp, th), lambda i, h, s: (0, h), w_buf),           # w1^T chunk
        _spec((1, th), lambda i, h, s: (0, h), w_buf),              # b1 chunk
        _spec((th, dp), lambda i, h, s: (h, 0), w_buf),             # w2^T chunk
        _spec((1, dp), lambda i, h, s: (0, 0), 1),                  # b2: resident
    ]
    args = [seed_arr, x2d, params["w1"], params["b1"], params["w2"], params["b2"]]

    if apply_dropout and not in_kernel_prng:
        # Portable dropout path (non-TPU backend / interpret): bits streamed in.
        bits = jax.random.bits(jax.random.PRNGKey(seed), (m, dp), dtype=jnp.uint32)
        in_specs.append(_spec((tm, dp), lambda i, h, s: (i, 0)))
        args.append(bits)

    scratch_shapes = [pltpu.VMEM((tm, dp), jnp.float32)] if multi_h else []

    kernel = functools.partial(
        _ffn_kernel, compute_dtype=cdt, precision=precision,
        apply_dropout=apply_dropout, in_kernel_prng=in_kernel_prng,
        threshold=threshold, inv_keep=inv_keep, multi_h=multi_h)

    bytes_accessed = (m * dinp * c_item + dinp * hp * c_item + hp * dp * c_item
                      + (hp + dp) * 4 + m * dp * o_item)
    if apply_dropout and not in_kernel_prng:
        bytes_accessed += m * dp * 4
    cost = pl.CostEstimate(flops=2 * m * dinp * hp + 2 * m * hp * dp,
                           transcendentals=0, bytes_accessed=int(bytes_accessed))

    out = pl.pallas_call(
        kernel,
        out_shape=jax.ShapeDtypeStruct((m, dp), out_dtype),
        grid_spec=pltpu.PrefetchScalarGridSpec(
            num_scalar_prefetch=1,
            grid=grid,
            in_specs=in_specs,
            out_specs=pl.BlockSpec((tm, dp), lambda i, h, s: (i, 0)),
            scratch_shapes=scratch_shapes,
        ),
        compiler_params=pltpu.CompilerParams(
            dimension_semantics=("parallel", "arbitrary"),  # M across TCs, H is a reduction
            vmem_limit_bytes=int(budget)),
        cost_estimate=cost,
    )(*args)

    if crop_output and dp != dout:
        # TODO(synk): this crop is an extra HBM pass; set crop_output=False and fuse
        # the [:, :dout] slice into the consumer when chaining kernels.
        out = out[:, :dout]
    return out.reshape(*orig_shape[:-1], out.shape[-1])


def init_params(key, input_dim, output_dim, hidden_dim):
    """Deterministic init mimicking nn.Linear's uniform(-1/sqrt(fan_in), 1/sqrt(fan_in))."""
    k1, k2, k3, k4 = jax.random.split(key, 4)
    bound1 = 1.0 / (input_dim ** 0.5)
    bound2 = 1.0 / (hidden_dim ** 0.5)
    w1 = jax.random.uniform(k1, (hidden_dim, input_dim), jnp.float32, -bound1, bound1)
    b1 = jax.random.uniform(k2, (hidden_dim,), jnp.float32, -bound1, bound1)
    w2 = jax.random.uniform(k3, (output_dim, hidden_dim), jnp.float32, -bound2, bound2)
    b2 = jax.random.uniform(k4, (output_dim,), jnp.float32, -bound2, bound2)
    return w1, b1, w2, b2


def _ref_ffn(x2d, w1, b1, w2, b2, precision=None):
    h = jnp.dot(x2d, w1.T, precision=precision) + b1
    return jnp.dot(h, w2.T, precision=precision) + b2


if __name__ == "__main__":
    key = jax.random.PRNGKey(0)
    k_x, k_p, k_p2 = jax.random.split(key, 3)
    HIGH = jax.lax.Precision.HIGHEST

    batch, seq, input_dim, hidden_dim, output_dim = 2, 8, 32, 64, 32
    x = jax.random.normal(k_x, (batch, seq, input_dim), dtype=jnp.float32)
    w1, b1, w2, b2 = init_params(k_p, input_dim, output_dim, hidden_dim)
    ref = _ref_ffn(x.reshape(-1, input_dim), w1, b1, w2, b2, precision=HIGH)

    # Production-style path: bf16 MXU matmuls (f32 accumulate), dropout active.
    params_bf16 = prepare_params(w1, b1, w2, b2, compute_dtype=jnp.bfloat16)
    y_train = feed_forward(x, params_bf16, dropout_p=0.1, training=True, seed=1234)
    y_train = jax.block_until_ready(y_train)
    assert y_train.shape == (batch, seq, output_dim)

    # f32 compute path with explicit HIGHEST precision: tight torch-f32 parity.
    params_f32 = prepare_params(w1, b1, w2, b2)
    y_f32 = feed_forward(x, params_f32, dropout_p=0.1, training=False, precision=HIGH)
    y_f32 = jax.block_until_ready(y_f32)
    assert jnp.allclose(y_f32.reshape(-1, output_dim), ref, atol=1e-4, rtol=1e-4)

    # bf16 compute path (default DEFAULT precision): looser tolerance.
    y_bf16 = feed_forward(x, params_bf16, dropout_p=0.1, training=False)
    y_bf16 = jax.block_until_ready(y_bf16)
    assert jnp.allclose(y_bf16.reshape(-1, output_dim), ref, atol=5e-2, rtol=5e-2)

    # H-chunked accumulation path (force >1 hidden chunk via block_h).
    hd2, od2 = 512, 128
    w1b, b1b, w2b, b2b = init_params(k_p2, input_dim, od2, hd2)
    ref2 = _ref_ffn(x.reshape(-1, input_dim), w1b, b1b, w2b, b2b, precision=HIGH)
    params2 = prepare_params(w1b, b1b, w2b, b2b)
    y2 = feed_forward(x, params2, dropout_p=0.1, training=False,
                      block_h=256, precision=HIGH)
    y2 = jax.block_until_ready(y2)
    assert y2.shape == (batch, seq, od2)
    assert jnp.allclose(y2.reshape(-1, od2), ref2, atol=1e-4, rtol=1e-4)

    # Dropout sanity: roughly p of the outputs are zeroed.
    zero_frac = float(jnp.mean(y_train == 0.0))
    assert 0.0 < zero_frac < 0.35, zero_frac

    print("KERNEL_OK")
</pallas_src>

<mosaic_0001>
module attributes {stable_mosaic.version = 11 : i64} {
  func.func @_ffn_kernel(%arg0: i32, %arg1: i32, %arg2: memref<1xi32, #tpu.memory_space<smem>>, %arg3: memref<16x128xbf16, #tpu.memory_space<vmem>>, %arg4: memref<128x128xbf16, #tpu.memory_space<vmem>>, %arg5: memref<1x128xf32, #tpu.memory_space<vmem>>, %arg6: memref<128x128xbf16, #tpu.memory_space<vmem>>, %arg7: memref<1x128xf32, #tpu.memory_space<vmem>>, %arg8: memref<16x128xi32, #tpu.memory_space<vmem>>, %arg9: memref<16x128xf32, #tpu.memory_space<vmem>>) attributes {dimension_semantics = [#tpu.dimension_semantics<parallel>, #tpu.dimension_semantics<arbitrary>], iteration_bounds = array<i64: 1, 1>, scalar_prefetch = 1 : i64, scratch_operands = 0 : i64, tpu.core_type = #tpu.core_type<tc>, window_params = [{transform_indices = @transform_0, window_bounds = array<i64: 16, 128>}, {pipeline_mode = #tpu.pipeline_mode<synchronous>, transform_indices = @transform_1, window_bounds = array<i64: 128, 128>}, {pipeline_mode = #tpu.pipeline_mode<synchronous>, transform_indices = @transform_2, window_bounds = array<i64: 1, 128>}, {pipeline_mode = #tpu.pipeline_mode<synchronous>, transform_indices = @transform_3, window_bounds = array<i64: 128, 128>}, {pipeline_mode = #tpu.pipeline_mode<synchronous>, transform_indices = @transform_4, window_bounds = array<i64: 1, 128>}, {transform_indices = @transform_5, window_bounds = array<i64: 16, 128>}, {transform_indices = @transform_6, window_bounds = array<i64: 16, 128>}]} {
    %c0 = arith.constant 0 : index
    %c0_0 = arith.constant 0 : index
    %0 = vector.load %arg3[%c0, %c0_0] : memref<16x128xbf16, #tpu.memory_space<vmem>>, vector<16x128xbf16>
    %c0_1 = arith.constant 0 : index
    %c0_2 = arith.constant 0 : index
    %1 = vector.load %arg4[%c0_1, %c0_2] : memref<128x128xbf16, #tpu.memory_space<vmem>>, vector<128x128xbf16>
    %cst = arith.constant dense<0.000000e+00> : vector<16x128xf32>
    %2 = tpu.matmul %0, %1, %cst {dimension_numbers = #tpu.dot_dimension_numbers<[1], [0], [0], [1], [0, 0, 1, 1], [], []>} : vector<16x128xbf16>, vector<128x128xbf16>, vector<16x128xf32> -> vector<16x128xf32>
    %c0_3 = arith.constant 0 : index
    %c0_4 = arith.constant 0 : index
    %3 = vector.load %arg5[%c0_3, %c0_4] : memref<1x128xf32, #tpu.memory_space<vmem>>, vector<1x128xf32>
    %4 = vector.broadcast %3 : vector<1x128xf32> to vector<16x128xf32>
    %5 = arith.addf %2, %4 : vector<16x128xf32>
    %6 = arith.truncf %5 : vector<16x128xf32> to vector<16x128xbf16>
    %c0_5 = arith.constant 0 : index
    %c0_6 = arith.constant 0 : index
    %7 = vector.load %arg6[%c0_5, %c0_6] : memref<128x128xbf16, #tpu.memory_space<vmem>>, vector<128x128xbf16>
    %cst_7 = arith.constant dense<0.000000e+00> : vector<16x128xf32>
    %8 = tpu.matmul %6, %7, %cst_7 {dimension_numbers = #tpu.dot_dimension_numbers<[1], [0], [0], [1], [0, 0, 1, 1], [], []>} : vector<16x128xbf16>, vector<128x128xbf16>, vector<16x128xf32> -> vector<16x128xf32>
    %c0_8 = arith.constant 0 : index
    %c0_9 = arith.constant 0 : index
    %9 = vector.load %arg7[%c0_8, %c0_9] : memref<1x128xf32, #tpu.memory_space<vmem>>, vector<1x128xf32>
    %10 = vector.broadcast %9 : vector<1x128xf32> to vector<16x128xf32>
    %11 = arith.addf %8, %10 : vector<16x128xf32>
    %c0_10 = arith.constant 0 : index
    %c0_11 = arith.constant 0 : index
    %12 = vector.load %arg8[%c0_10, %c0_11] : memref<16x128xi32, #tpu.memory_space<vmem>>, vector<16x128xi32>
    %c429496730_i32 = arith.constant 429496730 : i32
    %13 = vector.broadcast %c429496730_i32 : i32 to vector<16x128xi32>
    %14 = arith.cmpi uge, %12, %13 : vector<16x128xi32>
    %cst_12 = arith.constant 1.11111116 : f32
    %15 = vector.broadcast %cst_12 : f32 to vector<16x128xf32>
    %16 = arith.mulf %11, %15 : vector<16x128xf32>
    %cst_13 = arith.constant 0.000000e+00 : f32
    %17 = vector.broadcast %cst_13 : f32 to vector<16x128xf32>
    %18 = arith.select %14, %16, %17 : vector<16x128xi1>, vector<16x128xf32>
    %c0_14 = arith.constant 0 : index
    %c0_15 = arith.constant 0 : index
    %19 = vector.load %arg9[%c0_14, %c0_15] : memref<16x128xf32, #tpu.memory_space<vmem>>, vector<16x128xf32>
    tpu.vector_store %arg9[%c0_14, %c0_15], %18 {strides = array<i32>} : memref<16x128xf32, #tpu.memory_space<vmem>>, vector<16x128xf32>,
    return
  }
  func.func @transform_0(%arg0: i32, %arg1: i32, %arg2: memref<1xi32, #tpu.memory_space<smem>>) -> (i32, i32) {
    %c0_i32 = arith.constant 0 : i32
    %c0_i32_0 = arith.constant 0 : i32
    return %arg0, %c0_i32 : i32, i32
  }
  func.func @transform_1(%arg0: i32, %arg1: i32, %arg2: memref<1xi32, #tpu.memory_space<smem>>) -> (i32, i32) {
    %c0_i32 = arith.constant 0 : i32
    %c0_i32_0 = arith.constant 0 : i32
    return %c0_i32, %arg1 : i32, i32
  }
  func.func @transform_2(%arg0: i32, %arg1: i32, %arg2: memref<1xi32, #tpu.memory_space<smem>>) -> (i32, i32) {
    %c0_i32 = arith.constant 0 : i32
    %c0_i32_0 = arith.constant 0 : i32
    return %c0_i32, %arg1 : i32, i32
  }
  func.func @transform_3(%arg0: i32, %arg1: i32, %arg2: memref<1xi32, #tpu.memory_space<smem>>) -> (i32, i32) {
    %c0_i32 = arith.constant 0 : i32
    %c0_i32_0 = arith.constant 0 : i32
    return %arg1, %c0_i32 : i32, i32
  }
  func.func @transform_4(%arg0: i32, %arg1: i32, %arg2: memref<1xi32, #tpu.memory_space<smem>>) -> (i32, i32) {
    %c0_i32 = arith.constant 0 : i32
    %c0_i32_0 = arith.constant 0 : i32
    %c0_i32_1 = arith.constant 0 : i32
    return %c0_i32, %c0_i32_0 : i32, i32
  }
  func.func @transform_5(%arg0: i32, %arg1: i32, %arg2: memref<1xi32, #tpu.memory_space<smem>>) -> (i32, i32) {
    %c0_i32 = arith.constant 0 : i32
    %c0_i32_0 = arith.constant 0 : i32
    return %arg0, %c0_i32 : i32, i32
  }
  func.func @transform_6(%arg0: i32, %arg1: i32, %arg2: memref<1xi32, #tpu.memory_space<smem>>) -> (i32, i32) {
    %c0_i32 = arith.constant 0 : i32
    %c0_i32_0 = arith.constant 0 : i32
    return %arg0, %c0_i32 : i32, i32
  }
}

</mosaic_0001>

<bundles_post_ra>
// kernel: tpu_custom_call.1
= control target key start
LH: loop header
LB: loop body
LE: loop exit
PB: predicated region body
PF: predicated region fallthrough
CT: control target
= control target key end

     0   :  { %13 = vsyncpa [#allocation5], 0  ;;  %s653_s0 = inlined_call_operand.<no memory space> [shape: s32[1], index: 0, kind: input, shape index: {}]   ;;  %s654_s1 = inlined_call_operand.hbm [shape: bf16[16,128], index: 1, kind: input, shape index: {}]   ;;  %s655_s2 = inlined_call_operand.hbm [shape: bf16[128,128], index: 2, kind: input, shape index: {}]   ;;  %s656_s3 = inlined_call_operand.vmem [shape: f32[1,128], index: 3, kind: input, shape index: {}]   ;;  %s657_s4 = inlined_call_operand.hbm [shape: bf16[128,128], index: 4, kind: input, shape index: {}]   ;;  %s658_s5 = inlined_call_operand.vmem [shape: f32[1,128], index: 5, kind: input, shape index: {}]   ;;  %s659_s6 = inlined_call_operand.vmem [shape: u32[16,128], index: 6, kind: input, shape index: {}]   ;;  %s660_s7 = inlined_call_operand.hbm [shape: f32[16,128], index: 7, kind: output, shape index: {}]  }
   0x1   :  { %14 = vsyncpa [#allocation8], 0 }
   0x2   :  { %15 = vsyncpa [#allocation6], 0  ;;  %s527_s23 = smov [#allocation7]   ;;  %s528_s25 = smov [#allocation4]  }
   0x3   :  { %s33_s24 = sshll.u32 %s527_s23, 4  ;;  %s21_s26 = sshll.u32 %s528_s25, 4  ;;  %s34_s24 = int_to_ptr.vmem [resolvable:$true] %s33_s24  ;;  %s577_s26 = int_to_ptr.vmem [resolvable:$true] %s21_s26 }
   0x4   :  { %s433_s29 = scalar_lea.hbm %s655_s2, 1024 }
   0x5   :  { %p434_p0 = scmp.ne.s32.totalorder %s655_s2, %s433_s29  ;;  %p437_p1 = scmp.lt.u32.totalorder %s433_s29, %s655_s2 }
   0x7   :  { %p439_p2 = pnand %p437_p1, %p434_p0 }
   0x9   :  { %442 = shalt.err (!%p439_p2)
}
   0xa   :  { %s443_s11 = scalar_lea.vmem %s34_s24, 1024  ;;  %p448_p4 = scmp.lt.s32.totalorder %s34_s24, %s34_s24 }
   0xb   :  { %p444_p3 = scmp.ne.s32.totalorder %s34_s24, %s443_s11  ;;  %p449_p5 = scmp.lt.s32.totalorder %s443_s11, %s443_s11 }
   0xd   :  { %p450_p6 = por %p449_p5, %p448_p4 }
   0xf   :  { %p451_p7 = pnand %p450_p6, %p444_p3 }
  0x11   :  { %454 = shalt.err (!%p451_p7)
}
  0x12   :  { %s529_s12 = smov 64   ;;  %s530_s13 = smov 4  }
  0x13   :  { %39 = dma.hbm_to_vmem [thread:$0]  %s655_s2, 1024, %s34_s24, [#allocation8], %s529_s12, %s529_s12, %s530_s13  }
  0x14   :  { %s455_s18 = scalar_lea.hbm %s654_s1, 128 }
  0x15   :  { %p456_p8 = scmp.ne.s32.totalorder %s654_s1, %s455_s18  ;;  %p459_p9 = scmp.lt.u32.totalorder %s455_s18, %s654_s1 }
  0x17   :  { %p461_p10 = pnand %p459_p9, %p456_p8 }
  0x19   :  { %464 = shalt.err (!%p461_p10)
}
  0x1a   :  { %s465_s0 = scalar_lea.vmem %s577_s26, 128  ;;  %p470_p12 = scmp.lt.s32.totalorder %s577_s26, %s577_s26 }
  0x1b   :  { %p466_p11 = scmp.ne.s32.totalorder %s577_s26, %s465_s0  ;;  %p471_p13 = scmp.lt.s32.totalorder %s465_s0, %s465_s0 }
  0x1d   :  { %p472_p0 = por %p471_p13, %p470_p12 }
  0x1f   :  { %p473_p1 = pnand %p472_p0, %p466_p11 }
  0x21   :  { %476 = shalt.err (!%p473_p1)
}
  0x22   :  { %27 = dma.hbm_to_vmem [thread:$0]  %s654_s1, 128, %s577_s26, [#allocation5], %s529_s12, %s529_s12, %s530_s13  }
  0x23   :  { %s531_s24 = smov [#allocation9]   ;;  %s477_s29 = scalar_lea.hbm %s657_s4, 1024 }
  0x24   :  { %s47_s25 = sshll.u32 %s531_s24, 4  ;;  %p478_p2 = scmp.ne.s32.totalorder %s657_s4, %s477_s29  ;;  %s48_s25 = int_to_ptr.vmem [resolvable:$true] %s47_s25 }
  0x25   :  { %p481_p3 = scmp.lt.u32.totalorder %s477_s29, %s657_s4 }
  0x27   :  { %p483_p4 = pnand %p481_p3, %p478_p2 }
  0x29   :  { %486 = shalt.err (!%p483_p4)
}
  0x2a   :  { %s487_s11 = scalar_lea.vmem %s48_s25, 1024  ;;  %p492_p6 = scmp.lt.s32.totalorder %s48_s25, %s48_s25 }
  0x2b   :  { %p488_p5 = scmp.ne.s32.totalorder %s48_s25, %s487_s11  ;;  %p493_p7 = scmp.lt.s32.totalorder %s487_s11, %s487_s11 }
  0x2d   :  { %p494_p8 = por %p493_p7, %p492_p6 }
  0x2f   :  { %p495_p9 = pnand %p494_p8, %p488_p5 }
  0x31   :  { %498 = shalt.err (!%p495_p9)
}
  0x32   :  { %53 = dma.hbm_to_vmem [thread:$0]  %s657_s4, 1024, %s48_s25, [#allocation8], %s529_s12, %s529_s12, %s530_s13  }
  0x33   :  { %521 = dma.done.wait [#allocation5], 128  }
  0x34   :  { %522 = vsyncadd [#allocation5], 4294967168 }
  0x35   :  { %523 = dma.done.wait [#allocation8], 2048  }
  0x36   :  { %524 = vsyncadd [#allocation8], 4294965248  ;;  %v532_v0 = vmov 0.0   ;;  %vm533_vm0 = vmmov 0   ;;  %v416_v1 = vld [vmem:[#allocation7] sm:$0xff]   ;;  %v417_v2 = vld [vmem:[#allocation7 + $0x8] sm:$0xff]  }
  0x37   :  { %366 = vmatprep.subr.bf16.mxu0 %v532_v0  ;;  %382 = vmatprep.mubr.msk.bf16.mxu0 %vm533_vm0, %v532_v0  ;;  %v418_v3 = vld [vmem:[#allocation7 + $0x10] sm:$0xff]   ;;  %v425_v4 = vld [vmem:[#allocation9] sm:$0xff]   ;;  %v419_v5 = vld [vmem:[#allocation7 + $0x18] sm:$0xff]   ;;  %s534_s18 = smov [#allocation10]  }
  0x38   :  { %386 = vmatprep.subr.bf16.mxu1 %v532_v0  ;;  %402 = vmatprep.mubr.msk.bf16.mxu1 %vm533_vm0, %v532_v0  ;;  %v426_v6 = vld [vmem:[#allocation9 + $0x8] sm:$0xff]   ;;  %v420_v7 = vld [vmem:[#allocation7 + $0x20] sm:$0xff]   ;;  %v427_v8 = vld [vmem:[#allocation9 + $0x10] sm:$0xff]   ;;  %s316_s19 = sshll.u32 %s534_s18, 4  ;;  %s317_s19 = int_to_ptr.vmem [resolvable:$true] %s316_s19 }
  0x39   :  { %367 = vmatpush3.bf16.msra.mxu0 %v416_v1  ;;  %387 = vmatpush3.bf16.msra.mxu1 %v425_v4  ;;  %v421_v9 = vld [vmem:[#allocation7 + $0x28] sm:$0xff]   ;;  %v428_v10 = vld [vmem:[#allocation9 + $0x18] sm:$0xff]   ;;  %v422_v11 = vld [vmem:[#allocation7 + $0x30] sm:$0xff]   ;;  %p504_p11 = scmp.lt.s32.totalorder %s317_s19, %s317_s19 }
  0x3a   :  { %368 = vmatprep.subr.bf16.mxu0 %v532_v0  ;;  %388 = vmatprep.subr.bf16.mxu1 %v532_v0  ;;  %v429_v12 = vld [vmem:[#allocation9 + $0x20] sm:$0xff]   ;;  %v423_v13 = vld [vmem:[#allocation7 + $0x38] sm:$0xff]   ;;  %v430_v14 = vld [vmem:[#allocation9 + $0x28] sm:$0xff]  }
  0x3b   :  { %v424_v15 = vld [vmem:[#allocation4] sm:$0xff]   ;;  %v431_v16 = vld [vmem:[#allocation9 + $0x30] sm:$0xff]   ;;  %v302_v31 = vld [vmem:[%s659_s6 + $0x8] sm:$0xff] }
  0x3c   :  { %v432_v17 = vld [vmem:[#allocation9 + $0x38] sm:$0xff]   ;;  %vm304_vm2 = vcmp.ge.u32.totalorder %v302_v31, 429496730 }
  0x3d   :  { %369 = vmatpush3.bf16.msra.mxu0 %v417_v2  ;;  %389 = vmatpush3.bf16.msra.mxu1 %v426_v6  ;;  %v329_v18 = vld [vmem:[%s656_s3] ss:$0 sm:$0xff] }
  0x3e   :  { %370 = vmatprep.subr.bf16.mxu0 %v532_v0  ;;  %390 = vmatprep.subr.bf16.mxu1 %v532_v0  ;;  %v339_v26 = vld [vmem:[%s658_s5] ss:$0 sm:$0xff]  ;;  %s499_s5 = scalar_lea.vmem %s317_s19, 256 }
  0x3f   :  { %v301_v27 = vld [vmem:[%s659_s6] sm:$0xff]  ;;  %p500_p10 = scmp.ne.s32.totalorder %s317_s19, %s499_s5  ;;  %p505_p12 = scmp.lt.s32.totalorder %s499_s5, %s499_s5 }
  0x40   :  { %vm303_vm1 = vcmp.ge.u32.totalorder %v301_v27, 429496730 }
  0x41   :  { %371 = vmatpush3.bf16.msra.mxu0 %v418_v3  ;;  %391 = vmatpush3.bf16.msra.mxu1 %v427_v8  ;;  %p506_p13 = por %p505_p12, %p504_p11 }
  0x42   :  { %372 = vmatprep.subr.bf16.mxu0 %v532_v0  ;;  %392 = vmatprep.subr.bf16.mxu1 %v532_v0 }
  0x43   :  { %p507_p0 = pnand %p506_p13, %p500_p10 }
  0x45   :  { %373 = vmatpush3.bf16.msra.mxu0 %v419_v5  ;;  %393 = vmatpush3.bf16.msra.mxu1 %v428_v10 }
  0x46   :  { %374 = vmatprep.subr.bf16.mxu0 %v532_v0  ;;  %394 = vmatprep.subr.bf16.mxu1 %v532_v0 }
  0x49   :  { %375 = vmatpush3.bf16.msra.mxu0 %v420_v7  ;;  %395 = vmatpush3.bf16.msra.mxu1 %v429_v12 }
  0x4a   :  { %376 = vmatprep.subr.bf16.mxu0 %v532_v0  ;;  %396 = vmatprep.subr.bf16.mxu1 %v532_v0 }
  0x4d   :  { %377 = vmatpush3.bf16.msra.mxu0 %v421_v9  ;;  %397 = vmatpush3.bf16.msra.mxu1 %v430_v14 }
  0x4e   :  { %378 = vmatprep.subr.bf16.mxu0 %v532_v0  ;;  %398 = vmatprep.subr.bf16.mxu1 %v532_v0 }
  0x51   :  { %379 = vmatpush3.bf16.msra.mxu0 %v422_v11  ;;  %399 = vmatpush3.bf16.msra.mxu1 %v431_v16 }
  0x52   :  { %380 = vmatprep.subr.bf16.mxu0 %v532_v0  ;;  %400 = vmatprep.subr.bf16.mxu1 %v532_v0 }
  0x55   :  { %381 = vmatpush3.bf16.msra.mxu0 %v423_v13  ;;  %401 = vmatpush3.bf16.msra.mxu1 %v432_v17 }
  0x58   :  { %383 = vmatmul.mubr.bf16.vlgmr.msra.gmra.mrb[0].mxu0 %v424_v15 }
 0x12b   :  { %v181_v19 = vpop.f32.mrb[0].mxu0 }
 0x12c   :  { %v384_v20 = vpop.f32.mrb[1].mxu0  ;;  %v182_v22 = vadd.f32 %v329_v18, %v181_v19 }
 0x12d   :  { %v184_v21 = vpop.f32.mrb[2].mxu0 }
 0x12e   :  { %v185_v23 = vadd.f32 %v329_v18, %v184_v21  ;;  %v385_v24 = vpop.f32.mrb[3].mxu0 }
 0x130   :  { %v188_v25 = vpack.c.bf16 %v185_v23, %v182_v22 }
 0x132   :  { %403 = vmatmul.mubr.bf16.vlgmr.msra.gmra.mrb[0].mxu1 %v188_v25 }
 0x205   :  { %v294_v28 = vpop.f32.mrb[0].mxu1 }
 0x206   :  { %v295_v29 = vadd.f32 %v339_v26, %v294_v28  ;;  %v404_v30 = vpop.f32.mrb[1].mxu1 }
 0x207   :  { %v297_v32 = vpop.f32.mrb[2].mxu1 }
 0x208   :  { %v305_v33 = vmul.f32 1.1111112, %v295_v29  ;;  %v298_v34 = vadd.f32 %v339_v26, %v297_v32  ;;  %v405_v35 = vpop.f32.mrb[3].mxu1 }
 0x20a   :  { %v307_v36 = vsel %vm303_vm1, %v305_v33, 0.0  ;;  %v306_v37 = vmul.f32 1.1111112, %v298_v34 }
 0x20b   :  { %309 = vst [vmem:[#allocation10] sm:$0xff] %v307_v36 }
 0x20c   :  { %v308_v38 = vsel %vm304_vm2, %v306_v37, 0.0 }
 0x20d   :  { %310 = vst [vmem:[#allocation10 + $0x8] sm:$0xff] %v308_v38 }
 0x20e   :  { %510 = shalt.err (!%p507_p0)
}
 0x20f   :  { %s511_s21 = scalar_lea.hbm %s660_s7, 256 }
 0x210   :  { %p512_p1 = scmp.ne.s32.totalorder %s660_s7, %s511_s21  ;;  %p515_p2 = scmp.lt.u32.totalorder %s511_s21, %s660_s7 }
 0x212   :  { %p517_p3 = pnand %p515_p2, %p512_p1 }
 0x214   :  { %520 = shalt.err (!%p517_p3)
}
 0x215   :  { %s535_s24 = smov 128   ;;  %s536_s25 = smov 8  }
 0x216   :  { %322 = dma.vmem_to_hbm [thread:$0]  %s317_s19, 256, %s660_s7, [#allocation6], %s535_s24, %s535_s24, %s536_s25  }
 0x217   :  { %525 = dma.done.wait [#allocation6], 256  }
 0x218   :  { %526 = vsyncadd [#allocation6], 4294967040 }
 0x219   :  { %326 = vsyncpa [#allocation5], 1 }
 0x21a   :  { %327 = vsyncpa [#allocation8], 1 }
 0x21b   :  { %328 = vsyncpa [#allocation6], 1 }

</bundles_post_ra>
